<compile_context>
chip_gen: v7x
topology: tpu7x:2x2x1
jax: 0.10.0
libtpu: 0.0.40
codegen_flags: <defaults>
</compile_context>

<pallas_src>
import functools

import jax
import jax.numpy as jnp
from jax import lax
from jax.experimental import pallas as pl
from jax.experimental.pallas import tpu as pltpu

_LANE = 128
_MAX_BLOCK_ROWS = 4096            # f32 input block = 2 MiB; 3 inputs double-buffered ~< 12 MiB
_NSPLIT = 2                       # leading "parallel" axis -> both TCs on v7x
_VMEM_LIMIT = 32 * 1024 * 1024    # explicit scoped-VMEM budget (fits every generation)


def _round_up(x, m):
    return (x + m - 1) // m * m


def _si_partial_kernel(p_ref, t_ref, m_ref, s_ref, q_ref, n_ref, *,
                       rows, block_rows, blocks_per_split, nsplit):
    """Accumulate per-split (8,128) partials of sum(d), sum(d^2), count(valid)."""
    c = pl.program_id(0)   # split index ("parallel": sharded across TCs on v7x)
    i = pl.program_id(1)   # block index within the split ("arbitrary" reduction axis)

    @pl.when(i == 0)
    def _init():
        zeros = jnp.zeros((8, _LANE), jnp.float32)
        s_ref[...] = zeros
        q_ref[...] = zeros
        n_ref[...] = zeros

    mv = m_ref[...]
    valid = mv if jnp.issubdtype(mv.dtype, jnp.bool_) else (mv != 0)

    # Bound-mask rows past the end of the array (ragged last block, or a fully
    # out-of-range block of the second split). Only emitted when needed.
    if nsplit * blocks_per_split * block_rows != rows:
        blk = c * blocks_per_split + i
        row_idx = blk * block_rows + lax.broadcasted_iota(jnp.int32, valid.shape, 0)
        valid = jnp.logical_and(valid, row_idx < rows)

    # Cast in-kernel (free: VPU has large slack); never upcast in the wrapper.
    d = jnp.where(valid,
                  t_ref[...].astype(jnp.float32) - p_ref[...].astype(jnp.float32),
                  0.0)

    g = block_rows // 8   # block_rows is always a multiple of 8
    s_ref[...] += d.reshape(g, 8, _LANE).sum(axis=0)
    q_ref[...] += (d * d).reshape(g, 8, _LANE).sum(axis=0)
    n_ref[...] += valid.astype(jnp.float32).reshape(g, 8, _LANE).sum(axis=0)


def si_loss(pred, target, valid_mask, lambd=0.5):
    """Pallas TPU implementation of SiLoss.forward. Returns a scalar f32."""
    total = pred.size
    p = pred.reshape(-1)
    t = target.reshape(-1)
    m = valid_mask.reshape(-1)   # original dtype (bool) -> no extra HBM pass

    rows = total // _LANE
    aligned = rows * _LANE

    zero = jnp.zeros((), jnp.float32)
    s_part = q_part = n_part = zero

    if rows > 0:
        if aligned != total:
            # TODO(synk): this prefix slice still materializes a copy for
            # non-lane-aligned inputs; a truly zero-copy path needs
            # memory_space=pl.ANY + manual DMA of unaligned chunks.
            p2 = lax.slice(p, (0,), (aligned,)).reshape(rows, _LANE)
            t2 = lax.slice(t, (0,), (aligned,)).reshape(rows, _LANE)
            m2 = lax.slice(m, (0,), (aligned,)).reshape(rows, _LANE)
        else:
            p2 = p.reshape(rows, _LANE)
            t2 = t.reshape(rows, _LANE)
            m2 = m.reshape(rows, _LANE)

        block_rows = min(_MAX_BLOCK_ROWS, _round_up(rows, 8))
        blocks = pl.cdiv(rows, block_rows)
        nsplit = _NSPLIT if blocks >= _NSPLIT else 1
        bps = pl.cdiv(blocks, nsplit)   # blocks per split

        def in_map(c, i):
            # Clamp so every DMA window starts inside the array; fully
            # out-of-range blocks contribute nothing (bound mask in-kernel).
            return (jnp.minimum(c * bps + i, blocks - 1), 0)

        def out_map(c, i):
            return (c, 0)

        kernel = functools.partial(
            _si_partial_kernel, rows=rows, block_rows=block_rows,
            blocks_per_split=bps, nsplit=nsplit)

        part_shape = jax.ShapeDtypeStruct((nsplit * 8, _LANE), jnp.float32)
        s_out, q_out, n_out = pl.pallas_call(
            kernel,
            out_shape=(part_shape, part_shape, part_shape),
            grid_spec=pltpu.PrefetchScalarGridSpec(
                num_scalar_prefetch=0,
                grid=(nsplit, bps),
                in_specs=[
                    pl.BlockSpec((block_rows, _LANE), in_map),
                    pl.BlockSpec((block_rows, _LANE), in_map),
                    pl.BlockSpec((block_rows, _LANE), in_map),
                ],
                out_specs=[
                    pl.BlockSpec((8, _LANE), out_map),
                    pl.BlockSpec((8, _LANE), out_map),
                    pl.BlockSpec((8, _LANE), out_map),
                ],
            ),
            compiler_params=pltpu.CompilerParams(
                dimension_semantics=("parallel", "arbitrary"),
                vmem_limit_bytes=_VMEM_LIMIT),
        )(p2, t2, m2)

        s_part = jnp.sum(s_out)
        q_part = jnp.sum(q_out)
        n_part = jnp.sum(n_out)

    if aligned != total:
        # <128-element tail handled in the wrapper (tiny), added to partials.
        tp = lax.slice(p, (aligned,), (total,)).astype(jnp.float32)
        tt = lax.slice(t, (aligned,), (total,)).astype(jnp.float32)
        tm = lax.slice(m, (aligned,), (total,))
        tv = tm if jnp.issubdtype(tm.dtype, jnp.bool_) else (tm != 0)
        td = jnp.where(tv, tt - tp, 0.0)
        s_part = s_part + jnp.sum(td)
        q_part = q_part + jnp.sum(td * td)
        n_part = n_part + jnp.sum(tv.astype(jnp.float32))

    # NOTE: n == 0 (no valid pixels) yields NaN, matching torch semantics.
    mean = s_part / n_part
    mean_sq = q_part / n_part
    var = jnp.maximum(mean_sq - float(lambd) * mean * mean, 0.0)
    return jnp.sqrt(var)


def _reference(pred, target, valid_mask, lambd=0.5):
    d = jnp.where(valid_mask, target - pred, 0.0)
    n = jnp.sum(valid_mask.astype(jnp.float32))
    mean = jnp.sum(d) / n
    mean_sq = jnp.sum(d * d) / n
    return jnp.sqrt(jnp.maximum(mean_sq - lambd * mean * mean, 0.0))


if __name__ == "__main__":
    key = jax.random.PRNGKey(0)
    k1, k2, k3 = jax.random.split(key, 3)
    shape = (2, 4, 16, 16)  # NCHW, small synthetic depth maps

    pred = jax.random.uniform(k1, shape, jnp.float32, minval=0.1, maxval=10.0)
    target = jax.random.uniform(k2, shape, jnp.float32, minval=0.1, maxval=10.0)
    valid_mask = jax.random.uniform(k3, shape, jnp.float32) > 0.3  # bool mask

    loss = jax.block_until_ready(si_loss(pred, target, valid_mask))
    ref = jax.block_until_ready(_reference(pred, target, valid_mask))

    assert jnp.isfinite(loss), "loss is not finite"
    assert jnp.allclose(loss, ref, rtol=1e-5, atol=1e-6), (loss, ref)
    print("KERNEL_OK")
</pallas_src>

<mosaic_0001>
module attributes {stable_mosaic.version = 11 : i64} {
  func.func @_si_partial_kernel(%arg0: i32, %arg1: i32, %arg2: memref<16x128xf32, #tpu.memory_space<vmem>>, %arg3: memref<16x128xf32, #tpu.memory_space<vmem>>, %arg4: memref<16x128xi32, #tpu.memory_space<vmem>>, %arg5: memref<8x128xf32, #tpu.memory_space<vmem>>, %arg6: memref<8x128xf32, #tpu.memory_space<vmem>>, %arg7: memref<8x128xf32, #tpu.memory_space<vmem>>) attributes {dimension_semantics = [#tpu.dimension_semantics<parallel>, #tpu.dimension_semantics<arbitrary>], iteration_bounds = array<i64: 1, 1>, scalar_prefetch = 0 : i64, scratch_operands = 0 : i64, tpu.core_type = #tpu.core_type<tc>, window_params = [{transform_indices = @transform_0, window_bounds = array<i64: 16, 128>}, {transform_indices = @transform_1, window_bounds = array<i64: 16, 128>}, {transform_indices = @transform_2, window_bounds = array<i64: 16, 128>}, {transform_indices = @transform_3, window_bounds = array<i64: 8, 128>}, {transform_indices = @transform_4, window_bounds = array<i64: 8, 128>}, {transform_indices = @transform_5, window_bounds = array<i64: 8, 128>}]} {
    %c0_i32 = arith.constant 0 : i32
    %0 = arith.cmpi eq, %arg1, %c0_i32 : i32
    %1 = arith.extui %0 : i1 to i32
    %c0_i32_0 = arith.constant 0 : i32
    %2 = arith.cmpi ne, %1, %c0_i32_0 : i32
    scf.if %2 {
      %cst_22 = arith.constant 0.000000e+00 : f32
      %28 = vector.broadcast %cst_22 : f32 to vector<8x128xf32>
      %c0_23 = arith.constant 0 : index
      %c0_24 = arith.constant 0 : index
      %29 = vector.load %arg5[%c0_23, %c0_24] : memref<8x128xf32, #tpu.memory_space<vmem>>, vector<8x128xf32>
      tpu.vector_store %arg5[%c0_23, %c0_24], %28 {strides = array<i32>} : memref<8x128xf32, #tpu.memory_space<vmem>>, vector<8x128xf32>,
      %c0_25 = arith.constant 0 : index
      %c0_26 = arith.constant 0 : index
      %30 = vector.load %arg6[%c0_25, %c0_26] : memref<8x128xf32, #tpu.memory_space<vmem>>, vector<8x128xf32>
      tpu.vector_store %arg6[%c0_25, %c0_26], %28 {strides = array<i32>} : memref<8x128xf32, #tpu.memory_space<vmem>>, vector<8x128xf32>,
      %c0_27 = arith.constant 0 : index
      %c0_28 = arith.constant 0 : index
      %31 = vector.load %arg7[%c0_27, %c0_28] : memref<8x128xf32, #tpu.memory_space<vmem>>, vector<8x128xf32>
      tpu.vector_store %arg7[%c0_27, %c0_28], %28 {strides = array<i32>} : memref<8x128xf32, #tpu.memory_space<vmem>>, vector<8x128xf32>,
    } else {
    }
    %c0 = arith.constant 0 : index
    %c0_1 = arith.constant 0 : index
    %3 = vector.load %arg4[%c0, %c0_1] : memref<16x128xi32, #tpu.memory_space<vmem>>, vector<16x128xi32>
    %cst = arith.constant dense<0> : vector<16x128xi32>
    %4 = arith.cmpi ne, %3, %cst : vector<16x128xi32>
    %c0_2 = arith.constant 0 : index
    %c0_3 = arith.constant 0 : index
    %5 = vector.load %arg3[%c0_2, %c0_3] : memref<16x128xf32, #tpu.memory_space<vmem>>, vector<16x128xf32>
    %c0_4 = arith.constant 0 : index
    %c0_5 = arith.constant 0 : index
    %6 = vector.load %arg2[%c0_4, %c0_5] : memref<16x128xf32, #tpu.memory_space<vmem>>, vector<16x128xf32>
    %7 = arith.subf %5, %6 : vector<16x128xf32>
    %cst_6 = arith.constant 0.000000e+00 : f32
    %8 = vector.broadcast %cst_6 : f32 to vector<16x128xf32>
    %9 = arith.select %4, %7, %8 : vector<16x128xi1>, vector<16x128xf32>
    %c0_7 = arith.constant 0 : index
    %c0_8 = arith.constant 0 : index
    %10 = vector.load %arg5[%c0_7, %c0_8] : memref<8x128xf32, #tpu.memory_space<vmem>>, vector<8x128xf32>
    %11 = vector.shape_cast %9 : vector<16x128xf32> to vector<2x8x128xf32>
    %cst_9 = arith.constant dense<0.000000e+00> : vector<8x128xf32>
    %12 = vector.multi_reduction <add>, %11, %cst_9 [0] : vector<2x8x128xf32> to vector<8x128xf32>
    %13 = arith.addf %10, %12 : vector<8x128xf32>
    %c0_10 = arith.constant 0 : index
    %c0_11 = arith.constant 0 : index
    %14 = vector.load %arg5[%c0_10, %c0_11] : memref<8x128xf32, #tpu.memory_space<vmem>>, vector<8x128xf32>
    tpu.vector_store %arg5[%c0_10, %c0_11], %13 {strides = array<i32>} : memref<8x128xf32, #tpu.memory_space<vmem>>, vector<8x128xf32>,
    %c0_12 = arith.constant 0 : index
    %c0_13 = arith.constant 0 : index
    %15 = vector.load %arg6[%c0_12, %c0_13] : memref<8x128xf32, #tpu.memory_space<vmem>>, vector<8x128xf32>
    %16 = arith.mulf %9, %9 : vector<16x128xf32>
    %17 = vector.shape_cast %16 : vector<16x128xf32> to vector<2x8x128xf32>
    %cst_14 = arith.constant dense<0.000000e+00> : vector<8x128xf32>
    %18 = vector.multi_reduction <add>, %17, %cst_14 [0] : vector<2x8x128xf32> to vector<8x128xf32>
    %19 = arith.addf %15, %18 : vector<8x128xf32>
    %c0_15 = arith.constant 0 : index
    %c0_16 = arith.constant 0 : index
    %20 = vector.load %arg6[%c0_15, %c0_16] : memref<8x128xf32, #tpu.memory_space<vmem>>, vector<8x128xf32>
    tpu.vector_store %arg6[%c0_15, %c0_16], %19 {strides = array<i32>} : memref<8x128xf32, #tpu.memory_space<vmem>>, vector<8x128xf32>,
    %c0_17 = arith.constant 0 : index
    %c0_18 = arith.constant 0 : index
    %21 = vector.load %arg7[%c0_17, %c0_18] : memref<8x128xf32, #tpu.memory_space<vmem>>, vector<8x128xf32>
    %22 = arith.extui %4 : vector<16x128xi1> to vector<16x128xi32>
    %23 = arith.sitofp %22 : vector<16x128xi32> to vector<16x128xf32>
    %24 = vector.shape_cast %23 : vector<16x128xf32> to vector<2x8x128xf32>
    %cst_19 = arith.constant dense<0.000000e+00> : vector<8x128xf32>
    %25 = vector.multi_reduction <add>, %24, %cst_19 [0] : vector<2x8x128xf32> to vector<8x128xf32>
    %26 = arith.addf %21, %25 : vector<8x128xf32>
    %c0_20 = arith.constant 0 : index
    %c0_21 = arith.constant 0 : index
    %27 = vector.load %arg7[%c0_20, %c0_21] : memref<8x128xf32, #tpu.memory_space<vmem>>, vector<8x128xf32>
    tpu.vector_store %arg7[%c0_20, %c0_21], %26 {strides = array<i32>} : memref<8x128xf32, #tpu.memory_space<vmem>>, vector<8x128xf32>,
    return
  }
  func.func @transform_0(%arg0: i32, %arg1: i32) -> (i32, i32) {
    %c1_i32 = arith.constant 1 : i32
    %0 = arith.muli %arg0, %c1_i32 : i32
    %1 = arith.addi %0, %arg1 : i32
    %c0_i32 = arith.constant 0 : i32
    %2 = arith.minsi %1, %c0_i32 : i32
    %c0_i32_0 = arith.constant 0 : i32
    %c0_i32_1 = arith.constant 0 : i32
    return %2, %c0_i32_0 : i32, i32
  }
  func.func @transform_1(%arg0: i32, %arg1: i32) -> (i32, i32) {
    %c1_i32 = arith.constant 1 : i32
    %0 = arith.muli %arg0, %c1_i32 : i32
    %1 = arith.addi %0, %arg1 : i32
    %c0_i32 = arith.constant 0 : i32
    %2 = arith.minsi %1, %c0_i32 : i32
    %c0_i32_0 = arith.constant 0 : i32
    %c0_i32_1 = arith.constant 0 : i32
    return %2, %c0_i32_0 : i32, i32
  }
  func.func @transform_2(%arg0: i32, %arg1: i32) -> (i32, i32) {
    %c1_i32 = arith.constant 1 : i32
    %0 = arith.muli %arg0, %c1_i32 : i32
    %1 = arith.addi %0, %arg1 : i32
    %c0_i32 = arith.constant 0 : i32
    %2 = arith.minsi %1, %c0_i32 : i32
    %c0_i32_0 = arith.constant 0 : i32
    %c0_i32_1 = arith.constant 0 : i32
    return %2, %c0_i32_0 : i32, i32
  }
  func.func @transform_3(%arg0: i32, %arg1: i32) -> (i32, i32) {
    %c0_i32 = arith.constant 0 : i32
    %c0_i32_0 = arith.constant 0 : i32
    return %arg0, %c0_i32 : i32, i32
  }
  func.func @transform_4(%arg0: i32, %arg1: i32) -> (i32, i32) {
    %c0_i32 = arith.constant 0 : i32
    %c0_i32_0 = arith.constant 0 : i32
    return %arg0, %c0_i32 : i32, i32
  }
  func.func @transform_5(%arg0: i32, %arg1: i32) -> (i32, i32) {
    %c0_i32 = arith.constant 0 : i32
    %c0_i32_0 = arith.constant 0 : i32
    return %arg0, %c0_i32 : i32, i32
  }
}

</mosaic_0001>

<bundles_post_ra>
// kernel: tpu_custom_call.1
= control target key start
LH: loop header
LB: loop body
LE: loop exit
PB: predicated region body
PF: predicated region fallthrough
CT: control target
= control target key end

     0   :  { %11 = vsyncpa [#allocation3], 0  ;;  %s407_s0 = inlined_call_operand.vmem [shape: f32[16,128], index: 0, kind: input, shape index: {}]   ;;  %s408_s1 = inlined_call_operand.hbm [shape: f32[16,128], index: 1, kind: input, shape index: {}]   ;;  %s409_s2 = inlined_call_operand.vmem [shape: s32[16,128], index: 2, kind: input, shape index: {}]   ;;  %s410_s3 = inlined_call_operand.hbm [shape: f32[8,128], index: 3, kind: output, shape index: {0}]   ;;  %s411_s4 = inlined_call_operand.hbm [shape: f32[8,128], index: 4, kind: output, shape index: {1}]   ;;  %s412_s5 = inlined_call_operand.hbm [shape: f32[8,128], index: 5, kind: output, shape index: {2}]  }
   0x1   :  { %12 = vsyncpa [#allocation4], 0 }
   0x2   :  { %13 = vsyncpa [#allocation7], 0  ;;  %s303_s18 = smov [#allocation2]   ;;  %s209_s22 = scalar_lea.hbm %s408_s1, 256 }
   0x3   :  { %s39_s19 = sshll.u32 %s303_s18, 4  ;;  %p210_p0 = scmp.ne.s32.totalorder %s408_s1, %s209_s22  ;;  %s40_s19 = int_to_ptr.vmem [resolvable:$true] %s39_s19 }
   0x4   :  { %p213_p1 = scmp.lt.u32.totalorder %s209_s22, %s408_s1 }
   0x6   :  { %p215_p2 = pnand %p213_p1, %p210_p0 }
   0x8   :  { %218 = shalt.err (!%p215_p2)
}
   0x9   :  { %s219_s27 = scalar_lea.vmem %s40_s19, 256  ;;  %p224_p4 = scmp.lt.s32.totalorder %s40_s19, %s40_s19 }
   0xa   :  { %p220_p3 = scmp.ne.s32.totalorder %s40_s19, %s219_s27  ;;  %p225_p5 = scmp.lt.s32.totalorder %s219_s27, %s219_s27 }
   0xc   :  { %p226_p6 = por %p225_p5, %p224_p4 }
   0xe   :  { %p227_p7 = pnand %p226_p6, %p220_p3 }
  0x10   :  { %230 = shalt.err (!%p227_p7)
}
  0x11   :  { %s304_s28 = smov 128   ;;  %s305_s29 = smov 8  }
  0x12   :  { %45 = dma.hbm_to_vmem [thread:$0]  %s408_s1, 256, %s40_s19, [#allocation3], %s304_s28, %s304_s28, %s305_s29  }
  0x13   :  { %297 = dma.done.wait [#allocation3], 256  }
  0x14   :  { %298 = vsyncadd [#allocation3], 4294967040  ;;  %v114_v0 = vld [vmem:[%s409_s2] sm:$0xff]  ;;  %v115_v1 = vld [vmem:[%s409_s2 + $0x8] sm:$0xff]  ;;  %v306_v8 = vmov 0.0   ;;  %s307_s2 = smov [#allocation5]  }
  0x15   :  { %v118_v2 = vld [vmem:[#allocation2] sm:$0xff]  ;;  %vm116_vm0 = vcmp.ne.s32.totalorder %v114_v0, 0  ;;  %vm117_vm1 = vcmp.ne.s32.totalorder %v115_v1, 0  ;;  %v119_v3 = vld [vmem:[#allocation2 + $0x8] sm:$0xff]  ;;  %s150_s14 = sshll.u32 %s307_s2, 4  ;;  %s308_s15 = smov [#allocation6]   ;;  %s151_s14 = int_to_ptr.vmem [resolvable:$true] %s150_s14 }
  0x16   :  { %v120_v4 = vld [vmem:[%s407_s0] sm:$0xff]  ;;  %v121_v5 = vld [vmem:[%s407_s0 + $0x8] sm:$0xff]  ;;  %v200_v9 = vsel %vm116_vm0, 1.0, %v306_v8  ;;  %v201_v10 = vsel %vm117_vm1, 1.0, %v306_v8  ;;  %s160_s16 = sshll.u32 %s308_s15, 4  ;;  %s309_s17 = smov [#allocation8]   ;;  %s161_s16 = int_to_ptr.vmem [resolvable:$true] %s160_s16 }
  0x17   :  { %v122_v6 = vsub.f32 %v118_v2, %v120_v4  ;;  %v123_v7 = vsub.f32 %v119_v3, %v121_v5  ;;  %v141_v11 = vadd.f32 %v201_v10, %v200_v9  ;;  %s170_s18 = sshll.u32 %s309_s17, 4  ;;  %s231_s0 = scalar_lea.vmem %s151_s14, 128  ;;  %s364_s18 = int_to_ptr.vmem [resolvable:$true] %s170_s18 }
  0x18   :  { %p232_p8 = scmp.ne.s32.totalorder %s151_s14, %s231_s0  ;;  %p236_p9 = scmp.lt.s32.totalorder %s151_s14, %s151_s14 }
  0x19   :  { %v124_v12 = vsel %vm116_vm0, %v122_v6, 0.0  ;;  %v125_v13 = vsel %vm117_vm1, %v123_v7, 0.0  ;;  %143 = vst [vmem:[#allocation8] sm:$0xff] %v141_v11  ;;  %p237_p10 = scmp.lt.s32.totalorder %s231_s0, %s231_s0 }
  0x1a   :  { %v131_v14 = vmul.f32 %v124_v12, %v124_v12  ;;  %v132_v15 = vmul.f32 %v125_v13, %v125_v13  ;;  %v127_v16 = vadd.f32 %v125_v13, %v124_v12 }
  0x1b   :  { %p238_p11 = por %p237_p10, %p236_p9 }
  0x1c   :  { %v133_v17 = vadd.f32 %v132_v15, %v131_v14  ;;  %129 = vst [vmem:[#allocation5] sm:$0xff] %v127_v16 }
  0x1d   :  { %p239_p12 = pnand %p238_p11, %p232_p8 }
  0x1f   :  { %242 = shalt.err (!%p239_p12)
}
  0x20   :  { %s243_s21 = scalar_lea.hbm %s410_s3, 128 }
  0x21   :  { %p244_p13 = scmp.ne.s32.totalorder %s410_s3, %s243_s21  ;;  %p247_p0 = scmp.lt.u32.totalorder %s243_s21, %s410_s3 }
  0x23   :  { %p249_p1 = pnand %p247_p0, %p244_p13 }
  0x25   :  { %252 = shalt.err (!%p249_p1)
}
  0x26   :  { %153 = dma.vmem_to_hbm [thread:$0]  %s151_s14, 128, %s410_s3, [#allocation4]   ;;  %135 = vst [vmem:[#allocation6] sm:$0xff] %v133_v17 }
  0x27   :  { %s253_s28 = scalar_lea.vmem %s161_s16, 128  ;;  %p258_p3 = scmp.lt.s32.totalorder %s161_s16, %s161_s16 }
  0x28   :  { %p254_p2 = scmp.ne.s32.totalorder %s161_s16, %s253_s28  ;;  %p259_p4 = scmp.lt.s32.totalorder %s253_s28, %s253_s28 }
  0x2a   :  { %p260_p5 = por %p259_p4, %p258_p3 }
  0x2c   :  { %p261_p6 = pnand %p260_p5, %p254_p2 }
  0x2e   :  { %264 = shalt.err (!%p261_p6)
}
  0x2f   :  { %s265_s6 = scalar_lea.hbm %s411_s4, 128 }
  0x30   :  { %p266_p7 = scmp.ne.s32.totalorder %s411_s4, %s265_s6  ;;  %p269_p8 = scmp.lt.u32.totalorder %s265_s6, %s411_s4 }
  0x32   :  { %p271_p9 = pnand %p269_p8, %p266_p7 }
  0x34   :  { %274 = shalt.err (!%p271_p9)
}
  0x35   :  { %163 = dma.vmem_to_hbm [thread:$0]  %s161_s16, 128, %s411_s4, [#allocation7]  }
  0x36   :  { %s275_s12 = scalar_lea.vmem %s364_s18, 128  ;;  %p280_p11 = scmp.lt.s32.totalorder %s364_s18, %s364_s18 }
  0x37   :  { %p276_p10 = scmp.ne.s32.totalorder %s364_s18, %s275_s12  ;;  %p281_p12 = scmp.lt.s32.totalorder %s275_s12, %s275_s12 }
  0x39   :  { %p282_p13 = por %p281_p12, %p280_p11 }
  0x3b   :  { %p283_p0 = pnand %p282_p13, %p276_p10 }
  0x3d   :  { %286 = shalt.err (!%p283_p0)
}
  0x3e   :  { %s287_s2 = scalar_lea.hbm %s412_s5, 128 }
  0x3f   :  { %p288_p1 = scmp.ne.s32.totalorder %s412_s5, %s287_s2  ;;  %p291_p2 = scmp.lt.u32.totalorder %s287_s2, %s412_s5 }
  0x41   :  { %p293_p3 = pnand %p291_p2, %p288_p1 }
  0x43   :  { %296 = shalt.err (!%p293_p3)
}
  0x44   :  { %173 = dma.vmem_to_hbm [thread:$0]  %s364_s18, 128, %s412_s5, [#allocation7]  }
  0x45   :  { %299 = dma.done.wait [#allocation4], 128  }
  0x46   :  { %300 = vsyncadd [#allocation4], 4294967168 }
  0x47   :  { %301 = dma.done.wait [#allocation7], 256  }
  0x48   :  { %302 = vsyncadd [#allocation7], 4294967040 }
  0x49   :  { %183 = vsyncpa [#allocation3], 1 }
  0x4a   :  { %184 = vsyncpa [#allocation4], 1 }
  0x4b   :  { %185 = vsyncpa [#allocation7], 1 }

</bundles_post_ra>
